<compile_context>
chip_gen: v5e
topology: v5e:2x2
jax: 0.10.0
libtpu: 0.0.40
codegen_flags: <defaults>
</compile_context>

<pallas_src>
import jax
import jax.numpy as jnp
import numpy as np
from jax import lax
from jax.experimental import pallas as pl
from jax.experimental.pallas import tpu as pltpu


def sa_kernel(x_ref, w1_ref, w2_ref, w3_ref, out_ref):
    x = x_ref[...]        # (C, N, K) f32
    w1 = w1_ref[...]      # (1, 1, K)
    w2 = w2_ref[...]      # (C, 1, K)
    w3 = w3_ref[...]      # (C, 1, 1)

    # a[c, n] = sum_k x[c, n, k] * W_1[k]      (VPU multiply + lane reduce)
    a = jnp.sum(x * w1, axis=-1, keepdims=True)            # (C, N, 1)

    # left[n, j] = sum_c a[c, n] * W_2[c, j]   (VPU broadcast-MAC over C)
    left = jnp.sum(a * w2, axis=0)                          # (N, K)

    # b[n, k] = sum_c W_3[c] * x[c, n, k]      (VPU broadcast-MAC over C)
    b = jnp.sum(x * w3, axis=0)                             # (N, K)

    # S_l[n, m] = sum_k left[n, k] * b[m, k]   (single small MXU dot, rhs-T)
    out_ref[...] = lax.dot_general(
        left, b,
        dimension_numbers=(((1,), (1,)), ((), ())),
        preferred_element_type=jnp.float32,
    )                                                       # (N, N)


def sa_forward_batched(x, W_1, W_2, W_3):
    """Batched SA forward.

    x: (B, C, N, K_l) float32; W_1: (K_l,); W_2: (C, K_l); W_3: (C,).
    Returns (B, N, N) float32.
    """
    B, C, N, K = x.shape
    w1 = W_1.reshape(1, 1, K).astype(jnp.float32)
    w2 = W_2.reshape(C, 1, K).astype(jnp.float32)
    w3 = W_3.reshape(C, 1, 1).astype(jnp.float32)

    cost = pl.CostEstimate(
        flops=int(B * (6 * C * N * K + 2 * N * N * K)),
        transcendentals=0,
        bytes_accessed=int(4 * (B * C * N * K + K + C * K + C + B * N * N)),
    )

    return pl.pallas_call(
        sa_kernel,
        out_shape=jax.ShapeDtypeStruct((B, N, N), jnp.float32),
        grid=(B,),
        in_specs=[
            # x: one batch element per grid step (batch dim squeezed).
            pl.BlockSpec((None, C, N, K), lambda b: (b, 0, 0, 0)),
            # weights: whole array, resident across all grid steps.
            pl.BlockSpec((1, 1, K), lambda b: (0, 0, 0)),
            pl.BlockSpec((C, 1, K), lambda b: (0, 0, 0)),
            pl.BlockSpec((C, 1, 1), lambda b: (0, 0, 0)),
        ],
        out_specs=pl.BlockSpec((None, N, N), lambda b: (b, 0, 0)),
        compiler_params=pltpu.CompilerParams(
            dimension_semantics=("parallel",),
        ),
        cost_estimate=cost,
    )(x.astype(jnp.float32), w1, w2, w3)


def sa_forward(x, W_1, W_2, W_3):
    """Single-sample forward matching the PyTorch module: x (C, N, K_l) -> (N, N)."""
    return sa_forward_batched(x[None], W_1, W_2, W_3)[0]


def sa_reference(x, W_1, W_2, W_3):
    a = jnp.einsum("cnk,k->cn", x, W_1)              # (C, N)
    left = jnp.einsum("cn,ck->nk", a, W_2)           # (N, K)
    b = jnp.einsum("c,cnk->nk", W_3, x)              # (N, K)
    return jnp.einsum("nk,mk->nm", left, b)          # (N, N)


if __name__ == "__main__":
    # Shapes consistent with SA(C, N, K_l); small batch to amortize launch cost.
    B, C, N, K_l = 2, 4, 16, 8

    key = jax.random.PRNGKey(0)
    kx, k1, k2, k3 = jax.random.split(key, 4)
    xb = jax.random.normal(kx, (B, C, N, K_l), dtype=jnp.float32)
    W_1 = jax.random.normal(k1, (K_l,), dtype=jnp.float32)
    W_2 = jax.random.normal(k2, (C, K_l), dtype=jnp.float32)
    W_3 = jax.random.normal(k3, (C,), dtype=jnp.float32)
    # (V_s, b_s exist in __init__ but are unused in forward -> not needed.)

    # Batched kernel vs. reference.
    out_b = jax.block_until_ready(sa_forward_batched(xb, W_1, W_2, W_3))
    ref_b = jax.block_until_ready(
        jax.vmap(lambda x: sa_reference(x, W_1, W_2, W_3))(xb)
    )
    np.testing.assert_allclose(np.asarray(out_b), np.asarray(ref_b),
                               rtol=1e-5, atol=1e-4)

    # Unbatched path (exact PyTorch module signature).
    out1 = jax.block_until_ready(sa_forward(xb[0], W_1, W_2, W_3))
    np.testing.assert_allclose(np.asarray(out1), np.asarray(ref_b[0]),
                               rtol=1e-5, atol=1e-4)

    print("KERNEL_OK")
</pallas_src>

<mosaic_0001>
module attributes {stable_mosaic.version = 11 : i64} {
  func.func @sa_kernel(%arg0: i32, %arg1: memref<1x4x16x8xf32, #tpu.memory_space<vmem>>, %arg2: memref<1x1x8xf32, #tpu.memory_space<vmem>>, %arg3: memref<4x1x8xf32, #tpu.memory_space<vmem>>, %arg4: memref<4x1x1xf32, #tpu.memory_space<vmem>>, %arg5: memref<1x16x16xf32, #tpu.memory_space<vmem>>) attributes {dimension_semantics = [#tpu.dimension_semantics<parallel>], iteration_bounds = array<i64: 2>, scalar_prefetch = 0 : i64, scratch_operands = 0 : i64, tpu.core_type = #tpu.core_type<tc>, window_params = [{transform_indices = @transform_0, window_bounds = array<i64: 1, 4, 16, 8>}, {pipeline_mode = #tpu.pipeline_mode<synchronous>, transform_indices = @transform_1, window_bounds = array<i64: 1, 1, 8>}, {pipeline_mode = #tpu.pipeline_mode<synchronous>, transform_indices = @transform_2, window_bounds = array<i64: 4, 1, 8>}, {pipeline_mode = #tpu.pipeline_mode<synchronous>, transform_indices = @transform_3, window_bounds = array<i64: 4, 1, 1>}, {transform_indices = @transform_4, window_bounds = array<i64: 1, 16, 16>}]} {
    %c0 = arith.constant 0 : index
    %c0_0 = arith.constant 0 : index
    %c0_1 = arith.constant 0 : index
    %c0_2 = arith.constant 0 : index
    %0 = vector.load %arg1[%c0, %c0_0, %c0_1, %c0_2] : memref<1x4x16x8xf32, #tpu.memory_space<vmem>>, vector<1x4x16x8xf32>
    %1 = vector.shape_cast %0 : vector<1x4x16x8xf32> to vector<4x16x8xf32>
    %c0_3 = arith.constant 0 : index
    %c0_4 = arith.constant 0 : index
    %c0_5 = arith.constant 0 : index
    %2 = vector.load %arg2[%c0_3, %c0_4, %c0_5] : memref<1x1x8xf32, #tpu.memory_space<vmem>>, vector<1x1x8xf32>
    %c0_6 = arith.constant 0 : index
    %c0_7 = arith.constant 0 : index
    %c0_8 = arith.constant 0 : index
    %3 = vector.load %arg3[%c0_6, %c0_7, %c0_8] : memref<4x1x8xf32, #tpu.memory_space<vmem>>, vector<4x1x8xf32>
    %c0_9 = arith.constant 0 : index
    %c0_10 = arith.constant 0 : index
    %c0_11 = arith.constant 0 : index
    %4 = vector.load %arg4[%c0_9, %c0_10, %c0_11] : memref<4x1x1xf32, #tpu.memory_space<vmem>>, vector<4x1x1xf32>
    %5 = vector.broadcast %2 : vector<1x1x8xf32> to vector<4x16x8xf32>
    %6 = arith.mulf %1, %5 : vector<4x16x8xf32>
    %cst = arith.constant dense<0.000000e+00> : vector<4x16xf32>
    %7 = vector.multi_reduction <add>, %6, %cst [2] : vector<4x16x8xf32> to vector<4x16xf32>
    %8 = vector.shape_cast %7 : vector<4x16xf32> to vector<4x16x1xf32>
    %9 = vector.broadcast %8 : vector<4x16x1xf32> to vector<4x16x8xf32>
    %10 = vector.broadcast %3 : vector<4x1x8xf32> to vector<4x16x8xf32>
    %11 = arith.mulf %9, %10 : vector<4x16x8xf32>
    %cst_12 = arith.constant dense<0.000000e+00> : vector<16x8xf32>
    %12 = vector.multi_reduction <add>, %11, %cst_12 [0] : vector<4x16x8xf32> to vector<16x8xf32>
    %13 = vector.broadcast %4 : vector<4x1x1xf32> to vector<4x16x8xf32>
    %14 = arith.mulf %1, %13 : vector<4x16x8xf32>
    %cst_13 = arith.constant dense<0.000000e+00> : vector<16x8xf32>
    %15 = vector.multi_reduction <add>, %14, %cst_13 [0] : vector<4x16x8xf32> to vector<16x8xf32>
    %cst_14 = arith.constant dense<0.000000e+00> : vector<16x16xf32>
    %16 = tpu.matmul %12, %15, %cst_14 {dimension_numbers = #tpu.dot_dimension_numbers<[1], [1], [0], [0], [0, 0, 1, 0], [], []>} : vector<16x8xf32>, vector<16x8xf32>, vector<16x16xf32> -> vector<16x16xf32>
    %c0_15 = arith.constant 0 : index
    %c0_16 = arith.constant 0 : index
    %c0_17 = arith.constant 0 : index
    %17 = vector.load %arg5[%c0_15, %c0_16, %c0_17] : memref<1x16x16xf32, #tpu.memory_space<vmem>>, vector<1x16x16xf32>
    %18 = vector.shape_cast %17 : vector<1x16x16xf32> to vector<16x16xf32>
    %19 = vector.shape_cast %16 : vector<16x16xf32> to vector<1x16x16xf32>
    tpu.vector_store %arg5[%c0_15, %c0_16, %c0_17], %19 {strides = array<i32>} : memref<1x16x16xf32, #tpu.memory_space<vmem>>, vector<1x16x16xf32>,
    return
  }
  func.func @transform_0(%arg0: i32) -> (i32, i32, i32, i32) {
    %c0_i32 = arith.constant 0 : i32
    %c0_i32_0 = arith.constant 0 : i32
    %c0_i32_1 = arith.constant 0 : i32
    %c0_i32_2 = arith.constant 0 : i32
    return %arg0, %c0_i32, %c0_i32_0, %c0_i32_1 : i32, i32, i32, i32
  }
  func.func @transform_1(%arg0: i32) -> (i32, i32, i32) {
    %c0_i32 = arith.constant 0 : i32
    %c0_i32_0 = arith.constant 0 : i32
    %c0_i32_1 = arith.constant 0 : i32
    %c0_i32_2 = arith.constant 0 : i32
    return %c0_i32, %c0_i32_0, %c0_i32_1 : i32, i32, i32
  }
  func.func @transform_2(%arg0: i32) -> (i32, i32, i32) {
    %c0_i32 = arith.constant 0 : i32
    %c0_i32_0 = arith.constant 0 : i32
    %c0_i32_1 = arith.constant 0 : i32
    %c0_i32_2 = arith.constant 0 : i32
    return %c0_i32, %c0_i32_0, %c0_i32_1 : i32, i32, i32
  }
  func.func @transform_3(%arg0: i32) -> (i32, i32, i32) {
    %c0_i32 = arith.constant 0 : i32
    %c0_i32_0 = arith.constant 0 : i32
    %c0_i32_1 = arith.constant 0 : i32
    %c0_i32_2 = arith.constant 0 : i32
    return %c0_i32, %c0_i32_0, %c0_i32_1 : i32, i32, i32
  }
  func.func @transform_4(%arg0: i32) -> (i32, i32, i32) {
    %c0_i32 = arith.constant 0 : i32
    %c0_i32_0 = arith.constant 0 : i32
    %c0_i32_1 = arith.constant 0 : i32
    return %arg0, %c0_i32, %c0_i32_0 : i32, i32, i32
  }
}

</mosaic_0001>

<bundles_post_ra>
// kernel: tpu_custom_call.1
= control target key start
LH: loop header
LB: loop body
LE: loop exit
PB: predicated region body
PF: predicated region fallthrough
CT: control target
= control target key end

     0   :  { %9 = vsyncpa [#allocation3], 0  ;;  %s752_s0 = inlined_call_operand.vmem [shape: f32[2,4,16,8], index: 0, kind: input, shape index: {}]   ;;  %s753_s1 = inlined_call_operand.vmem [shape: f32[1,1,8], index: 1, kind: input, shape index: {}]   ;;  %s754_s2 = inlined_call_operand.vmem [shape: f32[4,1,8], index: 2, kind: input, shape index: {}]   ;;  %s755_s3 = inlined_call_operand.vmem [shape: f32[4,1,1], index: 3, kind: input, shape index: {}]   ;;  %s756_s4 = inlined_call_operand.hbm [shape: f32[2,16,16], index: 4, kind: output, shape index: {}]  }
   0x1   :  { %11 = vsyncpa [#allocation3 + $0x1], 0  ;;  %s610_s15 = smov 0   ;;  %s612_s16 = smov 0  }
   0x2   :  { %s614_s17 = smov 0   ;;  %s616_s18 = smov 0  }
   0x3 LB: > { %s631_s19 = sadd.s32 4294967295, %s580_s18   ;;  %s445_s20 = sadd.s32 4294967294, %s580_s18   ;;  %s580_s18 = sphi %s616_s18, %s762_s18   ;;  %s576_s17 = sphi %s614_s17, %s761_s17   ;;  %s572_s16 = sphi %s612_s16, %s760_s16   ;;  %s568_s15 = sphi %s610_s15, %s759_s15  }
   0x4   : > { %s635_s21 = sadd.s32 1, %s580_s18   ;;  %s113_s22 = sadd.s32 1, %s576_s17 }
   0x5   : > { %s110_s23 = ssub.s32 %s580_s18, %s635_s21  ;;  %p123_p0 = scmp.ne.s32.totalorder %s576_s17, %s572_s16 }
   0x6   : > { %p111_p1 = scmp.eq.s32.totalorder %s110_s23, 0  ;;  %p124_p2 = scmp.eq.s32.totalorder %s631_s19, 1 }
   0x7   : > { %p129_p3 = scmp.ne.s32.totalorder %s572_s16, %s568_s15  ;;  %p130_p4 = scmp.eq.s32.totalorder %s445_s20, 1 }
   0x8   : > { %s646_s24 = scalar_select %p111_p1, %s576_s17, %s113_s22  }
   0x9   : > { %p648_p5 = por %p124_p2, %p123_p0  ;;  %p652_p6 = por %p130_p4, %p129_p3 }
   0xa   : > { %p448_p7 = scmp.ge.s32.totalorder %s580_s18, 1  ;;  %p165_p8 = scmp.lt.s32.totalorder %s580_s18, 3 }
   0xc   : > { %p166_p9 = pnand %p448_p7, %p165_p8 }
   0xd   : > { %p191_p10 = scmp.lt.s32.totalorder (!%p166_p9), %s631_s19, 1  ;;  %s188_s7 = sand.u32 (!%p166_p9), 1, %s572_s16  }
   0xe   : > { %169 = sbr.rel (%p166_p9) target bundleno = 327 (0x147), region = 36  ;;  %s462_s9 = sshll.u32 (!%p166_p9), %s631_s19, 4 }
   0xf   : > { %s379_s12 = scalar_lea.hbm (!%p166_p9), %s756_s4, %s462_s9  ;;  %s368_s22 = scalar_lea.sflag (!%p166_p9), [#allocation3], %s188_s7 }
  0x10   : > { %s382_s20 = sshll.u32 (!%p166_p9), %s379_s12, 4  ;;  %s538_s29 = scalar_lea.hbm (!%p166_p9), %s756_s4, 32  ;;  %s383_s20 = int_to_ptr.hbm [resolvable:$true] %s382_s20 }
  0x11   : > { %s532_s23 = sshra.s32 (!%p166_p9), %s383_s20, 4  ;;  %s533_s23 = int_to_ptr.hbm [resolvable:$true] %s532_s23 }
  0x12   : > { %s534_s27 = scalar_lea.hbm (!%p166_p9), %s533_s23, 16  ;;  %p539_p0 = scmp.lt.s32.totalorder (!%p166_p9), %s533_s23, %s756_s4 }
  0x13   : > { %v509_v0 = vld [vmem:[%s755_s3 + $0x2] ss:$0 sm:$0xff]  ;;  %v582_v1 = vmov 0   ;;  %v510_v2 = vld [vmem:[%s755_s3] ss:$0 sm:$0xff]  ;;  %s192_s5 = scalar_select %p191_p10, %s631_s19, 1 }
  0x14   : > { %508 = vset.pattern.permute.xlu1 %v582_v1  ;;  %507 = vset.pattern.permute.xlu0 %v582_v1  ;;  %v513_v3 = vld [vmem:[%s753_s1] ss:$0 sm:$0xff]  ;;  %v511_v4 = vld [vmem:[%s755_s3 + $0x3] ss:$0 sm:$0xff]  ;;  %v512_v5 = vld [vmem:[%s755_s3 + $0x1] ss:$0 sm:$0xff]  ;;  %p535_p11 = scmp.ne.s32.totalorder %s533_s23, %s534_s27  ;;  %p540_p1 = scmp.lt.s32.totalorder %s538_s29, %s534_s27 }
  0x15   : > { %300 = vperm.xlu1 %508, %v509_v0   ;;  %292 = vperm.xlu0 %507, %v510_v2   ;;  %s461_s8 = sshll.u32 %s192_s5, 6  ;;  %vm224_vm0 = vcmask 64512   ;;  %v514_v61 = vld [vmem:[%s754_s2] ss:$0 sm:$0xff]  ;;  %v517_v62 = vld [vmem:[%s754_s2 + $0x1] ss:$0 sm:$0xff] }
  0x16   : > { %s195_s13 = scalar_lea.vmem %s752_s0, %s461_s8  ;;  %v515_v63 = vld [vmem:[%s754_s2 + $0x2] ss:$0 sm:$0xff]  ;;  %v516_v1 = vld [vmem:[%s754_s2 + $0x3] ss:$0 sm:$0xff]  ;;  %s449_s8 = sshll.u32 %s188_s7, 4  ;;  %vm364_vm1 = vcmask 130048  }
  0x17   : > { %v196_v6 = vld [vmem:[%s195_s13] sm:$0xff]  ;;  %v197_v8 = vld [vmem:[%s195_s13 + $0x8] sm:$0xff]  ;;  %v202_v18 = vld [vmem:[%s195_s13 + $0x30] sm:$0xff]  ;;  %p536_p12 = pnand %p535_p11, %p648_p5  ;;  %p541_p2 = por %p540_p1, %p539_p0 }
  0x18   : > { %v216_v7 = vmul.f32 %v513_v3, %v196_v6  ;;  %v217_v10 = vmul.f32 %v513_v3, %v197_v8  ;;  %v200_v12 = vld [vmem:[%s195_s13 + $0x20] sm:$0xff]  ;;  %v201_v15 = vld [vmem:[%s195_s13 + $0x28] sm:$0xff]  ;;  %v222_v19 = vmul.f32 %v513_v3, %v202_v18  ;;  %v203_v21 = vld [vmem:[%s195_s13 + $0x38] sm:$0xff] }
  0x19   : > { %v220_v13 = vmul.f32 %v513_v3, %v200_v12  ;;  %v221_v16 = vmul.f32 %v513_v3, %v201_v15  ;;  %v199_v22 = vld [vmem:[%s195_s13 + $0x18] sm:$0xff]  ;;  %v198_v23 = vld [vmem:[%s195_s13 + $0x10] sm:$0xff]  ;;  %v223_v24 = vmul.f32 %v513_v3, %v203_v21  ;;  %s190_s13 = scalar_lea.vmem [#allocation2], %s449_s8  ;;  %p537_p13 = pneg %p536_p12 }
  0x1a   : > { %v225_v9 = vsel %vm224_vm0, %v216_v7, 0.0  ;;  %v228_v11 = vsel %vm224_vm0, %v217_v10, 0.0  ;;  %v243_v20 = vsel %vm224_vm0, %v222_v19, 0.0  ;;  %v219_v25 = vmul.f32 %v513_v3, %v199_v22  ;;  %s380_s14 = sshll.u32 %s190_s13, 4  ;;  %s381_s14 = int_to_ptr.vmem [resolvable:$true] %s380_s14 }
  0x1b   : > { %226 = vadd.xlane.f32.xlu2 %v225_v9  ;;  %v237_v14 = vsel %vm224_vm0, %v220_v13, 0.0  ;;  %v240_v17 = vsel %vm224_vm0, %v221_v16, 0.0  ;;  %v218_v26 = vmul.f32 %v513_v3, %v198_v23  ;;  %v246_v27 = vsel %vm224_vm0, %v223_v24, 0.0  ;;  %p542_p3 = pnand %p541_p2, %p537_p13 }
  0x1c   : > { %v234_v28 = vsel %vm224_vm0, %v219_v25, 0.0 }
  0x1d   : > { %304 = vperm.xlu1 %508, %v511_v4   ;;  %296 = vperm.xlu0 %507, %v512_v5   ;;  %v231_v29 = vsel %vm224_vm0, %v218_v26, 0.0 }
  0x23   : > { %229 = vadd.xlane.f32.xlu2 %v228_v11 }
  0x2b   : > { %238 = vadd.xlane.f32.xlu2 %v237_v14 }
  0x33   : > { %241 = vadd.xlane.f32.xlu2 %v240_v17 }
  0x3b   : > { %244 = vadd.xlane.f32.xlu2 %v243_v20 }
  0x43   : > { %247 = vadd.xlane.f32.xlu2 %v246_v27 }
  0x47   : > { %235 = vadd.xlane.f32.xlu1 %v234_v28  ;;  %232 = vadd.xlane.f32.xlu0 %v231_v29 }
  0x87   : > { %v301_v30 = vpop.permute.xlu1 %300  ;;  %v293_v31 = vpop.permute.xlu0 %292 }
  0x88   : > { %v307_v32 = vmul.f32 %v293_v31, %v196_v6  ;;  %v308_v33 = vmul.f32 %v293_v31, %v197_v8  ;;  %v312_v36 = vmul.f32 %v301_v30, %v201_v15  ;;  %v311_v40 = vmul.f32 %v301_v30, %v200_v12 }
  0x8a   : > { %v315_v41 = vsel %vm224_vm0, %v307_v32, 0.0  ;;  %v322_v42 = vsel %vm224_vm0, %v308_v33, 0.0  ;;  %v325_v48 = vsel %vm224_vm0, %v312_v36, 0.0  ;;  %v318_v50 = vsel %vm224_vm0, %v311_v40, 0.0 }
  0x8e   : > { %v227_v39 = vpop.xlane.xlu2 %226 }
  0x8f   : > { %v305_v34 = vpop.permute.xlu1 %304  ;;  %v297_v35 = vpop.permute.xlu0 %296  ;;  %v261_v3 = vmul.f32 %v514_v61, %v227_v39 }
  0x90   : > { %v309_v37 = vmul.f32 %v297_v35, %v198_v23  ;;  %v310_v38 = vmul.f32 %v297_v35, %v199_v22  ;;  %v314_v43 = vmul.f32 %v305_v34, %v203_v21  ;;  %v313_v51 = vmul.f32 %v305_v34, %v202_v18 }
  0x91   : > { %v269_v13 = vsel %vm224_vm0, %v261_v3, 0.0 }
  0x92   : > { %v316_v44 = vsel %vm224_vm0, %v309_v37, 0.0  ;;  %v323_v45 = vsel %vm224_vm0, %v310_v38, 0.0  ;;  %v327_v52 = vsel %vm224_vm0, %v314_v43, 0.0  ;;  %v320_v56 = vsel %vm224_vm0, %v313_v51, 0.0 }
  0x93   : > { %v317_v46 = vadd.f32 %v316_v44, %v315_v41  ;;  %v324_v47 = vadd.f32 %v323_v45, %v322_v42 }
  0x95   : > { %v326_v49 = vadd.f32 %v325_v48, %v324_v47  ;;  %v319_v54 = vadd.f32 %v318_v50, %v317_v46 }
  0x96   : > { %v230_v55 = vpop.xlane.xlu2 %229 }
  0x97   : > { %v328_v53 = vadd.f32 %v327_v52, %v326_v49  ;;  %v321_v57 = vadd.f32 %v320_v56, %v319_v54  ;;  %v262_v0 = vmul.f32 %v514_v61, %v230_v55 }
  0x99   : > { %452 = vmatpush.xpose.msk.msra.mxu0 %vm224_vm0, %v328_v53  ;;  %463 = vmatpush.xpose.msk.msra.mxu1 %vm224_vm0, %v328_v53  ;;  %v276_v11 = vsel %vm224_vm0, %v262_v0, 0.0 }
  0x9d   : > { %453 = vmatpush.xpose.msk.msra.mxu0 %vm224_vm0, %v321_v57  ;;  %464 = vmatpush.xpose.msk.msra.mxu1 %vm224_vm0, %v321_v57 }
  0x9e   : > { %v239_v58 = vpop.xlane.xlu2 %238 }
  0x9f   : > { %v265_v9 = vmul.f32 %v515_v63, %v239_v58 }
  0xa1   : > { %v272_v20 = vsel %vm224_vm0, %v265_v9, 0.0 }
  0xa6   : > { %v242_v59 = vpop.xlane.xlu2 %241 }
  0xa7   : > { %v266_v5 = vmul.f32 %v515_v63, %v242_v59 }
  0xa9   : > { %v279_v17 = vsel %vm224_vm0, %v266_v5, 0.0 }
  0xae   : > { %v245_v60 = vpop.xlane.xlu2 %244 }
  0xaf   : > { %v267_v14 = vmul.f32 %v516_v1, %v245_v60 }
  0xb1   : > { %v274_v23 = vsel %vm224_vm0, %v267_v14, 0.0 }
  0xb6   : > { %v248_v2 = vpop.xlane.xlu2 %247 }
  0xb7   : > { %v268_v8 = vmul.f32 %v516_v1, %v248_v2 }
  0xb9   : > { %v281_v19 = vsel %vm224_vm0, %v268_v8, 0.0 }
  0xba   : > { %v236_v4 = vpop.xlane.xlu1 %235  ;;  %v233_v7 = vpop.xlane.xlu0 %232 }
  0xbb   : > { %v264_v6 = vmul.f32 %v517_v62, %v236_v4  ;;  %v263_v10 = vmul.f32 %v517_v62, %v233_v7 }
  0xbd   : > { %v277_v12 = vsel %vm224_vm0, %v264_v6, 0.0  ;;  %v270_v16 = vsel %vm224_vm0, %v263_v10, 0.0 }
  0xbe   : > { %v278_v15 = vadd.f32 %v277_v12, %v276_v11  ;;  %v271_v18 = vadd.f32 %v270_v16, %v269_v13 }
  0xc0   : > { %v280_v21 = vadd.f32 %v279_v17, %v278_v15  ;;  %v273_v22 = vadd.f32 %v272_v20, %v271_v18 }
  0xc2   : > { %v282_v24 = vadd.f32 %v281_v19, %v280_v21  ;;  %v275_v25 = vadd.f32 %v274_v23, %v273_v22 }
  0xc4   : > { %455 = vmatmul.msk.f32.vlgmr.msra.gmra.mxu1 %vm224_vm0, %v282_v24  ;;  %454 = vmatmul.msk.f32.vlgmr.msra.gmra.mxu0 %vm224_vm0, %v275_v25 }
 0x141   : > { %v361_v26 = vpop.f32.mrf.mxu1  ;;  %v358_v27 = vpop.f32.mrf.mxu0 }
 0x142   : > { %366 = vst.msk [vmem:[%s190_s13 + $0x8] sm:$0xff] %vm364_vm1, %v361_v26 }
 0x143   : > { %365 = vst.msk [vmem:[%s190_s13] sm:$0xff] %vm364_vm1, %v358_v27 }
 0x144   : > { %545 = shalt.err (!%p542_p3)
}
 0x145   : > { %s583_s6 = smov 128   ;;  %s584_s7 = smov 8  }
 0x146   : > { %465 = dma.vmem_to_hbm [thread:$0]  (%p648_p5), %s381_s14, 256, %s383_s20, %s368_s22, %s583_s6, %s583_s6, %s584_s7  }
 0x147 PF: > { %p471_p4 = scmp.ge.s32.totalorder %s580_s18, 2  ;;  %s397_s8 = sand.u32 1, %s568_s15  }
 0x148   : > { %s398_s9 = scalar_lea.sflag [#allocation3], %s397_s8 }
 0x149   : > { %p468_p7 = pnand %p471_p4, %p652_p6 }
 0x14b   : > { %p469_p8 = pneg %p468_p7 }
 0x14d   : > { %563 = dma.done.wait (%p469_p8), %s398_s9, 256  }
 0x14e   : > { %565 = vsyncadd (%p469_p8), %s398_s9, 4294967040  ;;  %p14_p9 = scmp.ge.s32.totalorder %s635_s21, 4   ;;  %s759_s15 = smov %s572_s16 }
 0x14f   : > { %s760_s16 = smov %s576_s17  ;;  %s761_s17 = smov %s646_s24 }
 0x150   : > { %s762_s18 = smov %s635_s21  ;;  %16 = sbr.rel (!%p14_p9) target bundleno = 3 (0x3), region = 71 }
 0x155   :  { %404 = vsyncpa [#allocation3], 1 }
 0x156   :  { %406 = vsyncpa [#allocation3 + $0x1], 1 }

</bundles_post_ra>
